<compile_context>
chip_gen: v7x
topology: tpu7x:2x2x1
jax: 0.10.0
libtpu: 0.0.40
codegen_flags: <defaults>
</compile_context>

<pallas_src>
import math
from functools import partial

import jax
import jax.numpy as jnp
from jax.experimental import pallas as pl
from jax.experimental.pallas import tpu as pltpu


def _round_up(x, m):
    return ((x + m - 1) // m) * m


def _pad2(a, rows, cols):
    return jnp.pad(a, ((0, rows - a.shape[0]), (0, cols - a.shape[1])))


def video_mil_kernel(
    x_ref,       # [TM, TK]     bf16  flattened pixel rows (TB samples x N videos)
    w_enc_ref,   # [TK, Dp]     bf16  encoder weight K-slice
    b_enc_ref,   # [1, Dp]      f32
    w_vu_ref,    # [Dp, 2*Hp]   bf16  fused [w_v | w_u]
    b_vu_ref,    # [1, 2*Hp]    f32   fused [b_v | b_u]
    w_attn_ref,  # [1, Hp]      f32
    w_cls_ref,   # [Dp, Cp]     bf16
    b_cls_ref,   # [1, Cp]      f32
    out_ref,     # [1, TB, Cp]  f32   logits for the TB samples of this row tile
    acc_ref,     # [TM, Dp]     f32   VMEM accumulator for the encoder GEMM
    *,
    n_videos: int,
    tb: int,
    h_pad: int,
):
    k = pl.program_id(1)

    @pl.when(k == 0)
    def _():
        acc_ref[...] = jnp.zeros_like(acc_ref)

    # --- encoder GEMM: bf16 operands on the MXU, f32 accumulation, K-tiled ----
    acc_ref[...] += jnp.dot(
        x_ref[...], w_enc_ref[...], preferred_element_type=jnp.float32
    )

    # --- epilogue only on the last K step --------------------------------------
    @pl.when(k == pl.num_programs(1) - 1)
    def _():
        tm = tb * n_videos

        # Encoder bias added in place: acc_ref now holds the final [TM, Dp] embeddings.
        acc_ref[...] = acc_ref[...] + b_enc_ref[...]

        # Fused gated-attention projection: one MXU push covers both branches.
        gate = (
            jnp.dot(acc_ref[...].astype(jnp.bfloat16), w_vu_ref[...],
                    preferred_element_type=jnp.float32)
            + b_vu_ref[...]
        )                                                                  # [TM, 2*Hp]
        h = jnp.tanh(gate[:, :h_pad]) * jax.nn.sigmoid(gate[:, h_pad:])    # [TM, Hp]
        scores = jnp.sum(h * w_attn_ref[...], axis=1, keepdims=True)       # [TM, 1]

        # Vectorized per-sample softmax pooling: a [TB, TM] block-diagonal group-
        # membership matrix turns the pooling sums of all TB samples into one MXU
        # matmul.  The tile-global max shift is softmax-shift-invariant (exact) and
        # overflow-safe, so no per-group max is needed.
        p = jnp.exp(scores - jnp.max(scores, keepdims=True))               # [TM, 1]
        r_idx = jax.lax.broadcasted_iota(jnp.int32, (tb, tm), 1)
        b_idx = jax.lax.broadcasted_iota(jnp.int32, (tb, tm), 0)
        g = jnp.logical_and(
            r_idx >= b_idx * n_videos, r_idx < (b_idx + 1) * n_videos
        ).astype(jnp.float32)                                              # [TB, TM]

        num = jnp.dot(g, p * acc_ref[...],
                      preferred_element_type=jnp.float32)                  # [TB, Dp]
        den = jnp.dot(g, p, preferred_element_type=jnp.float32)            # [TB, 1]
        pooled = num * pl.reciprocal(den, approx=True)                     # [TB, Dp]

        # Batched classifier head: a single [TB, Dp] x [Dp, Cp] MXU push for all samples.
        logits = (
            jnp.dot(pooled.astype(jnp.bfloat16), w_cls_ref[...],
                    preferred_element_type=jnp.float32)
            + b_cls_ref[...]
        )                                                                  # [TB, Cp]
        out_ref[0] = logits


def video_mil_forward(x, params, num_videos, *, tk=512):
    """x: [B, N, C, F, H, W] multi-video batch. Returns {"main": [B, num_classes]}."""
    B, N, C_in, F, H, W = x.shape
    assert N == num_videos
    P = C_in * F * H * W

    D = params["w_enc"].shape[1]
    Hh = params["w_v"].shape[1]
    C = params["w_cls"].shape[1]

    # Lane-dense padded feature dims (multiples of 128).
    Dp = _round_up(D, 128)
    Hp = _round_up(Hh, 128)
    Cp = _round_up(C, 128)

    # K tiling over the flattened pixel dim (multiples of 256 preferred for the
    # 256-wide MXU on v6e/v7x; 128 granularity is fine on v5e).
    assert tk % 128 == 0
    P_pad = _round_up(P, tk)
    num_k = P_pad // tk

    # ---- VMEM-budget-driven row tiling --------------------------------------
    try:
        vmem_cap = int(pltpu.get_tpu_info().vmem_capacity_bytes)
    except Exception:
        vmem_cap = 64 << 20                       # v7x per-core figure (most restrictive)
    budget = min(vmem_cap // 2, 96 << 20)

    base = math.lcm(N, 8)                         # whole samples per tile, sublane-aligned
    rows = B * N

    # Resident-VMEM model (bytes): double-buffered bf16 streams (x, w_enc) + f32
    # accumulator + grid-invariant weights/biases (default double-buffered; on v7x these
    # could be single-buffered via pipeline_mode to free Dp*(2Hp+Cp)*2 bytes) + out block.
    inv_bytes = 2 * (Dp * (2 * Hp) * 2 + Dp * Cp * 2 + 4 * (Dp + 2 * Hp + Hp + Cp))
    fixed_bytes = 2 * tk * Dp * 2 + inv_bytes
    per_row_bytes = 2 * tk * 2 + Dp * 4 + (2 * Cp * 4) // N
    if budget > fixed_bytes:
        tm_cap = max(base, (budget - fixed_bytes) // per_row_bytes)
    else:
        tm_cap = base
    tm_cap = min(tm_cap, 2048)                    # diminishing returns beyond ~2k rows
    TM = min(_round_up(rows, base), (tm_cap // base) * base)
    TM = max(TM, base)
    # Megacore: keep >= 2 tiles on the "parallel" M axis when there is enough work
    # (v7x has 2 TensorCores; v5e/v6e are unaffected by a 2-way split of this size).
    if TM >= _round_up(rows, base) and rows >= 2 * base:
        TM = _round_up((rows + 1) // 2, base)
    TB = TM // N                                  # samples per grid step
    B_pad = _round_up(B, TB)
    M_pad = B_pad * N
    num_m = M_pad // TM

    # Explicit scoped-VMEM budget (default 16/32 MiB would otherwise cap tile sizes).
    vmem_needed = fixed_bytes + TM * per_row_bytes + (4 << 20)   # + Mosaic scratch margin
    vmem_limit = int(min(max(vmem_needed, 16 << 20), int(vmem_cap * 0.9)))

    # Wrapper-side padding & dtype staging: bf16 for MXU operand streams,
    # f32 for biases / VPU-side constants. Zero padding is exact (contributes 0).
    x_rows = x.reshape(B * N, P).astype(jnp.bfloat16)
    x2 = jnp.pad(x_rows, ((0, M_pad - B * N), (0, P_pad - P)))

    w_enc = _pad2(params["w_enc"], P_pad, Dp).astype(jnp.bfloat16)
    b_enc = _pad2(params["b_enc"], 1, Dp).astype(jnp.float32)
    w_vu = jnp.concatenate(
        [_pad2(params["w_v"], Dp, Hp), _pad2(params["w_u"], Dp, Hp)], axis=1
    ).astype(jnp.bfloat16)                                    # [Dp, 2*Hp]
    b_vu = jnp.concatenate(
        [_pad2(params["b_v"], 1, Hp), _pad2(params["b_u"], 1, Hp)], axis=1
    ).astype(jnp.float32)                                     # [1, 2*Hp]
    w_attn = _pad2(params["w_attn"], 1, Hp).astype(jnp.float32)
    w_cls = _pad2(params["w_cls"], Dp, Cp).astype(jnp.bfloat16)
    b_cls = _pad2(params["b_cls"], 1, Cp).astype(jnp.float32)

    kernel = partial(video_mil_kernel, n_videos=N, tb=TB, h_pad=Hp)

    flops = (
        2 * M_pad * P_pad * Dp                  # encoder GEMM
        + 2 * M_pad * Dp * (2 * Hp)             # fused gating projection
        + 2 * num_m * TB * TM * (Dp + 1)        # group-matrix pooling matmuls
        + 2 * B_pad * Dp * Cp                   # classifier head
    )
    transcendentals = 2 * M_pad * Hp + M_pad    # tanh + sigmoid + exp
    bytes_accessed = (
        2 * M_pad * P_pad                       # x rows, read once
        + 2 * num_m * P_pad * Dp                # w_enc re-streamed once per M tile
        + 2 * (Dp * 2 * Hp + Dp * Cp)           # invariant bf16 weights, read once
        + 4 * (Dp + 2 * Hp + Hp + Cp)           # f32 biases
        + 4 * num_m * TB * Cp                   # logits written
    )

    # Grid-invariant weight/bias blocks (full arrays, constant index_map).
    grid_invariant = lambda shape: pl.BlockSpec(shape, lambda m, k: (0, 0))

    out = pl.pallas_call(
        kernel,
        out_shape=jax.ShapeDtypeStruct((num_m, TB, Cp), jnp.float32),
        grid_spec=pltpu.PrefetchScalarGridSpec(
            num_scalar_prefetch=0,
            grid=(num_m, num_k),                               # reduction (K) axis last
            in_specs=[
                pl.BlockSpec((TM, tk), lambda m, k: (m, k)),   # x rows
                pl.BlockSpec((tk, Dp), lambda m, k: (k, 0)),   # w_enc K-slice
                grid_invariant((1, Dp)),                       # b_enc
                grid_invariant((Dp, 2 * Hp)),                  # w_vu (fused)
                grid_invariant((1, 2 * Hp)),                   # b_vu (fused)
                grid_invariant((1, Hp)),                       # w_attn
                grid_invariant((Dp, Cp)),                      # w_cls
                grid_invariant((1, Cp)),                       # b_cls
            ],
            out_specs=pl.BlockSpec((1, TB, Cp), lambda m, k: (m, 0, 0)),
            scratch_shapes=[pltpu.VMEM((TM, Dp), jnp.float32)],
        ),
        compiler_params=pltpu.CompilerParams(
            dimension_semantics=("parallel", "arbitrary"),
            vmem_limit_bytes=vmem_limit,
        ),
        cost_estimate=pl.CostEstimate(
            flops=flops,
            transcendentals=transcendentals,
            bytes_accessed=bytes_accessed,
        ),
    )(x2, w_enc, b_enc, w_vu, b_vu, w_attn, w_cls, b_cls)

    logits = out.reshape(B_pad, Cp)[:B, :C]
    return {"main": logits}


def init_params(key, pixel_dim, embed_dim, attn_hidden, num_classes):
    ks = jax.random.split(key, 6)
    s = lambda fan_in: 1.0 / jnp.sqrt(jnp.float32(fan_in))
    return {
        "w_enc": jax.random.normal(ks[0], (pixel_dim, embed_dim), jnp.float32) * s(pixel_dim),
        "b_enc": jnp.zeros((1, embed_dim), jnp.float32),
        "w_v": jax.random.normal(ks[1], (embed_dim, attn_hidden), jnp.float32) * s(embed_dim),
        "b_v": jnp.zeros((1, attn_hidden), jnp.float32),
        "w_u": jax.random.normal(ks[2], (embed_dim, attn_hidden), jnp.float32) * s(embed_dim),
        "b_u": jnp.zeros((1, attn_hidden), jnp.float32),
        "w_attn": jax.random.normal(ks[3], (1, attn_hidden), jnp.float32) * s(attn_hidden),
        "w_cls": jax.random.normal(ks[4], (embed_dim, num_classes), jnp.float32) * s(embed_dim),
        "b_cls": jax.random.normal(ks[5], (1, num_classes), jnp.float32) * 0.01,
    }


def reference_forward(x, params, num_videos):
    """Pure-JAX reference with the same bf16-operand / f32-accumulate numerics."""
    B, N = x.shape[0], x.shape[1]
    xf = x.reshape(B, N, -1).astype(jnp.bfloat16)
    emb = jnp.einsum(
        "bnp,pd->bnd", xf, params["w_enc"].astype(jnp.bfloat16),
        preferred_element_type=jnp.float32,
    ) + params["b_enc"]                                              # [B, N, D] f32
    emb_bf = emb.astype(jnp.bfloat16)
    hv = jnp.tanh(
        jnp.einsum("bnd,dh->bnh", emb_bf, params["w_v"].astype(jnp.bfloat16),
                   preferred_element_type=jnp.float32) + params["b_v"]
    )
    hu = jax.nn.sigmoid(
        jnp.einsum("bnd,dh->bnh", emb_bf, params["w_u"].astype(jnp.bfloat16),
                   preferred_element_type=jnp.float32) + params["b_u"]
    )
    scores = jnp.sum(hv * hu * params["w_attn"], axis=-1, keepdims=True)  # [B, N, 1]
    attn = jax.nn.softmax(scores, axis=1)
    pooled = jnp.sum(attn * emb, axis=1)                                  # [B, D]
    logits = jnp.dot(
        pooled.astype(jnp.bfloat16), params["w_cls"].astype(jnp.bfloat16),
        preferred_element_type=jnp.float32,
    ) + params["b_cls"]
    return {"main": logits}


if __name__ == "__main__":
    # Small multi-video batch: B=2 samples, N=4 videos each, each video 3x2x8x8.
    B, NUM_VIDEOS, C_IN, F, H, W = 2, 4, 3, 2, 8, 8
    EMBED_DIM, ATTN_HIDDEN, NUM_CLASSES = 32, 16, 5
    PIXEL_DIM = C_IN * F * H * W   # 384

    key = jax.random.PRNGKey(0)
    kx, kp = jax.random.split(key)
    x = jax.random.normal(kx, (B, NUM_VIDEOS, C_IN, F, H, W), jnp.float32)
    params = init_params(kp, PIXEL_DIM, EMBED_DIM, ATTN_HIDDEN, NUM_CLASSES)

    # tk=256 (MXU-aligned) exercises the K-tiled accumulator path (P=384 -> 2 K steps).
    out = video_mil_forward(x, params, NUM_VIDEOS, tk=256)
    logits = jax.block_until_ready(out["main"])

    ref = reference_forward(x, params, NUM_VIDEOS)["main"]
    assert logits.shape == (B, NUM_CLASSES)
    # bf16 operands + f32 accumulation in both paths; tolerance covers bf16 rounding
    # and the approx reciprocal in the softmax normalizer.
    assert jnp.allclose(logits, ref, atol=1e-2, rtol=1e-2)

    print("KERNEL_OK")
</pallas_src>

<mosaic_0001>
module attributes {stable_mosaic.version = 11 : i64} {
  func.func @video_mil_kernel(%arg0: i32, %arg1: i32, %arg2: memref<8x256xbf16, #tpu.memory_space<vmem>>, %arg3: memref<256x128xbf16, #tpu.memory_space<vmem>>, %arg4: memref<1x128xf32, #tpu.memory_space<vmem>>, %arg5: memref<128x256xbf16, #tpu.memory_space<vmem>>, %arg6: memref<1x256xf32, #tpu.memory_space<vmem>>, %arg7: memref<1x128xf32, #tpu.memory_space<vmem>>, %arg8: memref<128x128xbf16, #tpu.memory_space<vmem>>, %arg9: memref<1x128xf32, #tpu.memory_space<vmem>>, %arg10: memref<1x2x128xf32, #tpu.memory_space<vmem>>, %arg11: memref<8x128xf32, #tpu.memory_space<vmem>>) attributes {dimension_semantics = [#tpu.dimension_semantics<parallel>, #tpu.dimension_semantics<arbitrary>], iteration_bounds = array<i64: 1, 2>, scalar_prefetch = 0 : i64, scratch_operands = 1 : i64, tpu.core_type = #tpu.core_type<tc>, window_params = [{transform_indices = @transform_0, window_bounds = array<i64: 8, 256>}, {transform_indices = @transform_1, window_bounds = array<i64: 256, 128>}, {pipeline_mode = #tpu.pipeline_mode<synchronous>, transform_indices = @transform_2, window_bounds = array<i64: 1, 128>}, {pipeline_mode = #tpu.pipeline_mode<synchronous>, transform_indices = @transform_3, window_bounds = array<i64: 128, 256>}, {pipeline_mode = #tpu.pipeline_mode<synchronous>, transform_indices = @transform_4, window_bounds = array<i64: 1, 256>}, {pipeline_mode = #tpu.pipeline_mode<synchronous>, transform_indices = @transform_5, window_bounds = array<i64: 1, 128>}, {pipeline_mode = #tpu.pipeline_mode<synchronous>, transform_indices = @transform_6, window_bounds = array<i64: 128, 128>}, {pipeline_mode = #tpu.pipeline_mode<synchronous>, transform_indices = @transform_7, window_bounds = array<i64: 1, 128>}, {transform_indices = @transform_8, window_bounds = array<i64: 1, 2, 128>}]} {
    %c0_i32 = arith.constant 0 : i32
    %0 = arith.cmpi eq, %arg1, %c0_i32 : i32
    %1 = arith.extui %0 : i1 to i32
    %c0_i32_0 = arith.constant 0 : i32
    %2 = arith.cmpi ne, %1, %c0_i32_0 : i32
    scf.if %2 {
      %cst_9 = arith.constant 0.000000e+00 : f32
      %12 = vector.broadcast %cst_9 : f32 to vector<8x128xf32>
      %c0_10 = arith.constant 0 : index
      %c0_11 = arith.constant 0 : index
      %13 = vector.load %arg11[%c0_10, %c0_11] : memref<8x128xf32, #tpu.memory_space<vmem>>, vector<8x128xf32>
      tpu.vector_store %arg11[%c0_10, %c0_11], %12 {strides = array<i32>} : memref<8x128xf32, #tpu.memory_space<vmem>>, vector<8x128xf32>,
    } else {
    }
    %c0 = arith.constant 0 : index
    %c0_1 = arith.constant 0 : index
    %3 = vector.load %arg11[%c0, %c0_1] : memref<8x128xf32, #tpu.memory_space<vmem>>, vector<8x128xf32>
    %c0_2 = arith.constant 0 : index
    %c0_3 = arith.constant 0 : index
    %4 = vector.load %arg2[%c0_2, %c0_3] : memref<8x256xbf16, #tpu.memory_space<vmem>>, vector<8x256xbf16>
    %c0_4 = arith.constant 0 : index
    %c0_5 = arith.constant 0 : index
    %5 = vector.load %arg3[%c0_4, %c0_5] : memref<256x128xbf16, #tpu.memory_space<vmem>>, vector<256x128xbf16>
    %cst = arith.constant dense<0.000000e+00> : vector<8x128xf32>
    %6 = tpu.matmul %4, %5, %cst {dimension_numbers = #tpu.dot_dimension_numbers<[1], [0], [0], [1], [0, 0, 1, 1], [], []>} : vector<8x256xbf16>, vector<256x128xbf16>, vector<8x128xf32> -> vector<8x128xf32>
    %7 = arith.addf %3, %6 : vector<8x128xf32>
    %c0_6 = arith.constant 0 : index
    %c0_7 = arith.constant 0 : index
    %8 = vector.load %arg11[%c0_6, %c0_7] : memref<8x128xf32, #tpu.memory_space<vmem>>, vector<8x128xf32>
    tpu.vector_store %arg11[%c0_6, %c0_7], %7 {strides = array<i32>} : memref<8x128xf32, #tpu.memory_space<vmem>>, vector<8x128xf32>,
    %c1_i32 = arith.constant 1 : i32
    %9 = arith.cmpi eq, %arg1, %c1_i32 : i32
    %10 = arith.extui %9 : i1 to i32
    %c0_i32_8 = arith.constant 0 : i32
    %11 = arith.cmpi ne, %10, %c0_i32_8 : i32
    scf.if %11 {
      %c0_9 = arith.constant 0 : index
      %c0_10 = arith.constant 0 : index
      %12 = vector.load %arg11[%c0_9, %c0_10] : memref<8x128xf32, #tpu.memory_space<vmem>>, vector<8x128xf32>
      %c0_11 = arith.constant 0 : index
      %c0_12 = arith.constant 0 : index
      %13 = vector.load %arg4[%c0_11, %c0_12] : memref<1x128xf32, #tpu.memory_space<vmem>>, vector<1x128xf32>
      %14 = vector.broadcast %13 : vector<1x128xf32> to vector<8x128xf32>
      %15 = arith.addf %12, %14 : vector<8x128xf32>
      %c0_13 = arith.constant 0 : index
      %c0_14 = arith.constant 0 : index
      %16 = vector.load %arg11[%c0_13, %c0_14] : memref<8x128xf32, #tpu.memory_space<vmem>>, vector<8x128xf32>
      tpu.vector_store %arg11[%c0_13, %c0_14], %15 {strides = array<i32>} : memref<8x128xf32, #tpu.memory_space<vmem>>, vector<8x128xf32>,
      %c0_15 = arith.constant 0 : index
      %c0_16 = arith.constant 0 : index
      %17 = vector.load %arg11[%c0_15, %c0_16] : memref<8x128xf32, #tpu.memory_space<vmem>>, vector<8x128xf32>
      %18 = arith.truncf %17 : vector<8x128xf32> to vector<8x128xbf16>
      %c0_17 = arith.constant 0 : index
      %c0_18 = arith.constant 0 : index
      %19 = vector.load %arg5[%c0_17, %c0_18] : memref<128x256xbf16, #tpu.memory_space<vmem>>, vector<128x256xbf16>
      %cst_19 = arith.constant dense<0.000000e+00> : vector<8x256xf32>
      %20 = tpu.matmul %18, %19, %cst_19 {dimension_numbers = #tpu.dot_dimension_numbers<[1], [0], [0], [1], [0, 0, 1, 1], [], []>} : vector<8x128xbf16>, vector<128x256xbf16>, vector<8x256xf32> -> vector<8x256xf32>
      %c0_20 = arith.constant 0 : index
      %c0_21 = arith.constant 0 : index
      %21 = vector.load %arg6[%c0_20, %c0_21] : memref<1x256xf32, #tpu.memory_space<vmem>>, vector<1x256xf32>
      %22 = vector.broadcast %21 : vector<1x256xf32> to vector<8x256xf32>
      %23 = arith.addf %20, %22 : vector<8x256xf32>
      %24 = vector.extract_strided_slice %23 {offsets = [0, 0], sizes = [8, 128], strides = [1, 1]} : vector<8x256xf32> to vector<8x128xf32>
      %25 = math.tanh %24 : vector<8x128xf32>
      %26 = vector.extract_strided_slice %23 {offsets = [0, 128], sizes = [8, 128], strides = [1, 1]} : vector<8x256xf32> to vector<8x128xf32>
      %27 = arith.negf %26 : vector<8x128xf32>
      %28 = math.exp %27 : vector<8x128xf32>
      %cst_22 = arith.constant 1.000000e+00 : f32
      %29 = vector.broadcast %cst_22 : f32 to vector<8x128xf32>
      %30 = arith.addf %29, %28 : vector<8x128xf32>
      %31 = arith.divf %29, %30 : vector<8x128xf32>
      %32 = arith.mulf %25, %31 : vector<8x128xf32>
      %c0_23 = arith.constant 0 : index
      %c0_24 = arith.constant 0 : index
      %33 = vector.load %arg7[%c0_23, %c0_24] : memref<1x128xf32, #tpu.memory_space<vmem>>, vector<1x128xf32>
      %34 = vector.broadcast %33 : vector<1x128xf32> to vector<8x128xf32>
      %35 = arith.mulf %32, %34 : vector<8x128xf32>
      %cst_25 = arith.constant dense<0.000000e+00> : vector<8xf32>
      %36 = vector.multi_reduction <add>, %35, %cst_25 [1] : vector<8x128xf32> to vector<8xf32>
      %37 = vector.shape_cast %36 : vector<8xf32> to vector<8x1xf32>
      %38 = vector.shape_cast %37 : vector<8x1xf32> to vector<1x8x1xf32>
      %cst_26 = arith.constant dense<0xFF800000> : vector<1xf32>
      %39 = vector.multi_reduction <maximumf>, %38, %cst_26 [1, 2] : vector<1x8x1xf32> to vector<1xf32>
      %40 = vector.shape_cast %39 : vector<1xf32> to vector<1x1x1xf32>
      %41 = vector.extract %40[0, 0, 0] : f32 from vector<1x1x1xf32>
      %42 = vector.broadcast %41 : f32 to vector<1x1xf32>
      %43 = vector.broadcast %42 : vector<1x1xf32> to vector<8x1xf32>
      %44 = arith.subf %37, %43 : vector<8x1xf32>
      %45 = math.exp %44 : vector<8x1xf32>
      %46 = tpu.iota {dimensions = array<i32: 1>} : vector<2x8xi32>
      %47 = tpu.iota {dimensions = array<i32: 0>} : vector<2x8xi32>
      %c4_i32 = arith.constant 4 : i32
      %48 = vector.broadcast %c4_i32 : i32 to vector<2x8xi32>
      %49 = arith.muli %47, %48 : vector<2x8xi32>
      %50 = arith.cmpi sge, %46, %49 : vector<2x8xi32>
      %c1_i32_27 = arith.constant 1 : i32
      %51 = vector.broadcast %c1_i32_27 : i32 to vector<2x8xi32>
      %52 = arith.addi %47, %51 : vector<2x8xi32>
      %c4_i32_28 = arith.constant 4 : i32
      %53 = vector.broadcast %c4_i32_28 : i32 to vector<2x8xi32>
      %54 = arith.muli %52, %53 : vector<2x8xi32>
      %55 = arith.cmpi slt, %46, %54 : vector<2x8xi32>
      %56 = arith.andi %50, %55 : vector<2x8xi1>
      %57 = arith.extui %56 : vector<2x8xi1> to vector<2x8xi32>
      %58 = arith.sitofp %57 : vector<2x8xi32> to vector<2x8xf32>
      %c0_29 = arith.constant 0 : index
      %c0_30 = arith.constant 0 : index
      %59 = vector.load %arg11[%c0_29, %c0_30] : memref<8x128xf32, #tpu.memory_space<vmem>>, vector<8x128xf32>
      %60 = vector.broadcast %45 : vector<8x1xf32> to vector<8x128xf32>
      %61 = arith.mulf %60, %59 : vector<8x128xf32>
      %cst_31 = arith.constant dense<0.000000e+00> : vector<2x128xf32>
      %62 = tpu.matmul %58, %61, %cst_31 {dimension_numbers = #tpu.dot_dimension_numbers<[1], [0], [0], [1], [0, 0, 1, 1], [], []>} : vector<2x8xf32>, vector<8x128xf32>, vector<2x128xf32> -> vector<2x128xf32>
      %cst_32 = arith.constant dense<0.000000e+00> : vector<2x1xf32>
      %63 = tpu.matmul %58, %45, %cst_32 {dimension_numbers = #tpu.dot_dimension_numbers<[1], [0], [0], [1], [0, 0, 1, 1], [], []>} : vector<2x8xf32>, vector<8x1xf32>, vector<2x1xf32> -> vector<2x1xf32>
      %64 = tpu.reciprocal %63 {approx = true} : vector<2x1xf32> -> vector<2x1xf32>
      %65 = vector.broadcast %64 : vector<2x1xf32> to vector<2x128xf32>
      %66 = arith.mulf %62, %65 : vector<2x128xf32>
      %67 = arith.truncf %66 : vector<2x128xf32> to vector<2x128xbf16>
      %c0_33 = arith.constant 0 : index
      %c0_34 = arith.constant 0 : index
      %68 = vector.load %arg8[%c0_33, %c0_34] : memref<128x128xbf16, #tpu.memory_space<vmem>>, vector<128x128xbf16>
      %cst_35 = arith.constant dense<0.000000e+00> : vector<2x128xf32>
      %69 = tpu.matmul %67, %68, %cst_35 {dimension_numbers = #tpu.dot_dimension_numbers<[1], [0], [0], [1], [0, 0, 1, 1], [], []>} : vector<2x128xbf16>, vector<128x128xbf16>, vector<2x128xf32> -> vector<2x128xf32>
      %c0_36 = arith.constant 0 : index
      %c0_37 = arith.constant 0 : index
      %70 = vector.load %arg9[%c0_36, %c0_37] : memref<1x128xf32, #tpu.memory_space<vmem>>, vector<1x128xf32>
      %71 = vector.broadcast %70 : vector<1x128xf32> to vector<2x128xf32>
      %72 = arith.addf %69, %71 : vector<2x128xf32>
      %c0_38 = arith.constant 0 : index
      %c0_39 = arith.constant 0 : index
      %c0_40 = arith.constant 0 : index
      %73 = vector.load %arg10[%c0_38, %c0_39, %c0_40] : memref<1x2x128xf32, #tpu.memory_space<vmem>>, vector<1x2x128xf32>
      %74 = vector.shape_cast %73 : vector<1x2x128xf32> to vector<2x128xf32>
      %75 = vector.shape_cast %72 : vector<2x128xf32> to vector<1x2x128xf32>
      tpu.vector_store %arg10[%c0_38, %c0_39, %c0_40], %75 {strides = array<i32>} : memref<1x2x128xf32, #tpu.memory_space<vmem>>, vector<1x2x128xf32>,
    } else {
    }
    return
  }
  func.func @transform_0(%arg0: i32, %arg1: i32) -> (i32, i32) {
    %c0_i32 = arith.constant 0 : i32
    return %arg0, %arg1 : i32, i32
  }
  func.func @transform_1(%arg0: i32, %arg1: i32) -> (i32, i32) {
    %c0_i32 = arith.constant 0 : i32
    %c0_i32_0 = arith.constant 0 : i32
    return %arg1, %c0_i32 : i32, i32
  }
  func.func @transform_2(%arg0: i32, %arg1: i32) -> (i32, i32) {
    %c0_i32 = arith.constant 0 : i32
    %c0_i32_0 = arith.constant 0 : i32
    %c0_i32_1 = arith.constant 0 : i32
    return %c0_i32, %c0_i32_0 : i32, i32
  }
  func.func @transform_3(%arg0: i32, %arg1: i32) -> (i32, i32) {
    %c0_i32 = arith.constant 0 : i32
    %c0_i32_0 = arith.constant 0 : i32
    %c0_i32_1 = arith.constant 0 : i32
    return %c0_i32, %c0_i32_0 : i32, i32
  }
  func.func @transform_4(%arg0: i32, %arg1: i32) -> (i32, i32) {
    %c0_i32 = arith.constant 0 : i32
    %c0_i32_0 = arith.constant 0 : i32
    %c0_i32_1 = arith.constant 0 : i32
    return %c0_i32, %c0_i32_0 : i32, i32
  }
  func.func @transform_5(%arg0: i32, %arg1: i32) -> (i32, i32) {
    %c0_i32 = arith.constant 0 : i32
    %c0_i32_0 = arith.constant 0 : i32
    %c0_i32_1 = arith.constant 0 : i32
    return %c0_i32, %c0_i32_0 : i32, i32
  }
  func.func @transform_6(%arg0: i32, %arg1: i32) -> (i32, i32) {
    %c0_i32 = arith.constant 0 : i32
    %c0_i32_0 = arith.constant 0 : i32
    %c0_i32_1 = arith.constant 0 : i32
    return %c0_i32, %c0_i32_0 : i32, i32
  }
  func.func @transform_7(%arg0: i32, %arg1: i32) -> (i32, i32) {
    %c0_i32 = arith.constant 0 : i32
    %c0_i32_0 = arith.constant 0 : i32
    %c0_i32_1 = arith.constant 0 : i32
    return %c0_i32, %c0_i32_0 : i32, i32
  }
  func.func @transform_8(%arg0: i32, %arg1: i32) -> (i32, i32, i32) {
    %c0_i32 = arith.constant 0 : i32
    %c0_i32_0 = arith.constant 0 : i32
    %c0_i32_1 = arith.constant 0 : i32
    return %arg0, %c0_i32, %c0_i32_0 : i32, i32, i32
  }
}

</mosaic_0001>

<bundles_post_ra>
// kernel: tpu_custom_call.1
= control target key start
LH: loop header
LB: loop body
LE: loop exit
PB: predicated region body
PF: predicated region fallthrough
CT: control target
= control target key end

     0   :  { %s2048_s0 = inlined_call_operand.hbm [shape: bf16[8,512], index: 0, kind: input, shape index: {}]   ;;  %s2049_s1 = inlined_call_operand.hbm [shape: bf16[512,128], index: 1, kind: input, shape index: {}]   ;;  %s2050_s2 = inlined_call_operand.vmem [shape: f32[1,128], index: 2, kind: input, shape index: {}]   ;;  %s2051_s3 = inlined_call_operand.hbm [shape: bf16[128,256], index: 3, kind: input, shape index: {}]   ;;  %s2052_s4 = inlined_call_operand.vmem [shape: f32[1,256], index: 4, kind: input, shape index: {}]   ;;  %s2053_s5 = inlined_call_operand.vmem [shape: f32[1,128], index: 5, kind: input, shape index: {}]   ;;  %s2054_s6 = inlined_call_operand.hbm [shape: bf16[128,128], index: 6, kind: input, shape index: {}]   ;;  %s2055_s7 = inlined_call_operand.vmem [shape: f32[1,128], index: 7, kind: input, shape index: {}]   ;;  %s2056_s8 = inlined_call_operand.hbm [shape: f32[1,2,128], index: 8, kind: output, shape index: {}]  }
   0x1   :  { %2062 = sst [smem:[#allocation17_spill]] %s2048_s0 }
   0x2   :  { %2063 = sst [smem:[#allocation18_spill]] %s2051_s3 }
   0x3   :  { %2064 = sst [smem:[#allocation19_spill]] %s2054_s6 }
   0x4   :  { %13 = vsyncpa [#allocation4], 0 }
   0x5   :  { %15 = vsyncpa [#allocation4 + $0x1], 0 }
   0x6   :  { %16 = vsyncpa [#allocation7], 0 }
   0x7   :  { %18 = vsyncpa [#allocation7 + $0x1], 0 }
   0x8   :  { %19 = vsyncpa [#allocation10], 0 }
   0x9   :  { %20 = vsyncpa [#allocation5], 0  ;;  %s1738_s27 = smov 0   ;;  %s1740_s28 = smov 0  }
   0xa   :  { %s1742_s29 = smov 0   ;;  %s1744_s30 = smov 0  }
   0xb   :  { %s1746_s9 = smov 0   ;;  %s1748_s10 = smov 0  }
   0xc LB: > { %s1767_s11 = sadd.s32 4294967295, %s1678_s10   ;;  %p60_p0 = scmp.ne.s32.totalorder %s1662_s28, %s1658_s27  ;;  %s1678_s10 = sphi %s1748_s10, %s26_s10   ;;  %s1674_s9 = sphi %s1746_s9, %s2085_s9   ;;  %s1670_s30 = sphi %s1744_s30, %s2084_s30   ;;  %s1666_s29 = sphi %s1742_s29, %s2083_s29   ;;  %s1662_s28 = sphi %s1740_s28, %s2082_s28   ;;  %s1658_s27 = sphi %s1738_s27, %s2081_s27  }
   0xd   : > { %p2057_p1 = scmp.eq.s32.totalorder %s1767_s11, 0  ;;  %p1174_p2 = scmp.ge.s32.totalorder %s1678_s10, 1 }
   0xe   : > { %p249_p3 = scmp.lt.s32.totalorder %s1678_s10, 3  ;;  %s1680_s14 = smov [#allocation8]  }
   0xf   : > { %p1775_p4 = por %p2057_p1, %p60_p0  ;;  %s264_s15 = sshll.u32 %s1680_s14, 4  ;;  %s265_s15 = int_to_ptr.vmem [resolvable:$true] %s264_s15 }
  0x10   : > { %p1779_p5 = pnand %p1174_p2, %p249_p3  ;;  %s1681_s17 = smov [#allocation9]  }
  0x11   : > { %s2065_s12 = scalar_select %p1775_p4, 1, 0 }
  0x12   : > { %s2066_s13 = scalar_select %p1779_p5, 1, 0 }
  0x13   : > { %p1329_p6 = pneg %p1779_p5  ;;  %s283_s18 = sshll.u32 %s1681_s17, 4  ;;  %s1791_s18 = int_to_ptr.vmem [resolvable:$true] %s283_s18 }
  0x14   : > { %s2068_s3 = sld [smem:[#allocation18_spill]] }
  0x15   : > { %p1787_p7 = pnand %p1329_p6, %p2057_p1 }
  0x17   : > { %p1472_p9 = pneg %p1787_p7 }
  0x1a   : > { %s1470_s21 = scalar_lea.hbm %s2068_s3, 2048 }
  0x1b   : > { %p1471_p8 = scmp.ne.s32.totalorder %s2068_s3, %s1470_s21  ;;  %p1477_p12 = scmp.lt.u32.totalorder %s1470_s21, %s2068_s3 }
  0x1d   : > { %p1473_p10 = pnand %p1472_p9, %p1471_p8 }
  0x1f   : > { %p1474_p11 = pneg %p1473_p10 }
  0x21   : > { %p1479_p13 = pnand %p1477_p12, %p1474_p11 }
  0x23   : > { %1482 = shalt.err (!%p1479_p13)
}
  0x24   : > { %s1483_s26 = scalar_lea.vmem %s265_s15, 2048  ;;  %p1491_p6 = scmp.lt.s32.totalorder %s265_s15, %s265_s15 }
  0x25   : > { %p1484_p0 = scmp.ne.s32.totalorder %s265_s15, %s1483_s26  ;;  %p1492_p1 = scmp.lt.s32.totalorder %s1483_s26, %s1483_s26 }
  0x27   : > { %p1486_p2 = pnand %p1484_p0, %p1472_p9  ;;  %p1493_p4 = por %p1492_p1, %p1491_p6 }
  0x29   : > { %p1487_p3 = pneg %p1486_p2 }
  0x2b   : > { %p1494_p5 = pnand %p1493_p4, %p1487_p3 }
  0x2d   : > { %1497 = shalt.err (!%p1494_p5)
}
  0x2e   : > { %s1682_s27 = smov 128   ;;  %s1683_s14 = smov 8  }
  0x2f   : > { %1332 = dma.hbm_to_vmem [thread:$0]  (!%p1787_p7), %s2068_s3, 2048, %s265_s15, [#allocation7], %s1682_s27, %s1682_s27, %s1683_s14  }
  0x30   : > { %s2069_s6 = sld [smem:[#allocation19_spill]] }
  0x36   : > { %s1498_s22 = scalar_lea.hbm %s2069_s6, 1024 }
  0x37   : > { %p1499_p8 = scmp.ne.s32.totalorder %s2069_s6, %s1498_s22  ;;  %p1505_p5 = scmp.lt.u32.totalorder %s1498_s22, %s2069_s6 }
  0x39   : > { %p1501_p1 = pnand %p1499_p8, %p1472_p9 }
  0x3b   : > { %p1502_p4 = pneg %p1501_p1 }
  0x3d   : > { %p1507_p10 = pnand %p1505_p5, %p1502_p4 }
  0x3f   : > { %1510 = shalt.err (!%p1507_p10)
}
  0x40   : > { %s1511_s15 = scalar_lea.vmem %s1791_s18, 1024  ;;  %p1519_p0 = scmp.lt.s32.totalorder %s1791_s18, %s1791_s18 }
  0x41   : > { %p1512_p11 = scmp.ne.s32.totalorder %s1791_s18, %s1511_s15  ;;  %p1520_p2 = scmp.lt.s32.totalorder %s1511_s15, %s1511_s15 }
  0x43   : > { %p1514_p12 = pnand %p1512_p11, %p1472_p9  ;;  %p1521_p3 = por %p1520_p2, %p1519_p0 }
  0x45   : > { %p1515_p13 = pneg %p1514_p12 }
  0x47   : > { %p1522_p6 = pnand %p1521_p3, %p1515_p13 }
  0x49   : > { %1525 = shalt.err (!%p1522_p6)
}
  0x4a   : > { %s2060_s27 = smov 64   ;;  %s2061_s14 = smov 4  }
  0x4b   : > { %1335 = dma.hbm_to_vmem [thread:$0]  (!%p1787_p7), %s2069_s6, 1024, %s1791_s18, [#allocation10], %s2060_s27, %s2060_s27, %s2061_s14  }
  0x4c   : > { %s35_s20 = sadd.s32 1, %s1674_s9  ;;  %s47_s21 = sadd.s32 1, %s1666_s29 }
  0x4d   : > { %p36_p9 = scmp.ge.s32.totalorder %s35_s20, 2  ;;  %p54_p8 = scmp.ne.s32.totalorder %s1666_s29, %s1662_s28 }
  0x4e   : > { %p55_p1 = scmp.eq.s32.totalorder %s1678_s10, 0  ;;  %p1345_p4 = scmp.lt.s32.totalorder %s1678_s10, 2 }
  0x4f   : > { %s2087_s20 = smov (%p36_p9, %s35_s20), 0  ;;  %s1852_s16 = sand.u32 1, %s1666_s29  }
  0x50   : > { %p56_p5 = por %p55_p1, %p54_p8  ;;  %s43_s22 = ssub.s32 %s1674_s9, %s2087_s20 }
  0x51   : > { %p45_p10 = scmp.eq.s32.totalorder %s43_s22, 0  ;;  %s1178_s18 = sshll.u32 %s1852_s16, 3 }
  0x52   : > { %s1244_s23 = sshll.u32 %s1674_s9, 7  ;;  %s2070_s0 = sld [smem:[#allocation17_spill]] }
  0x53   : > { %s1859_s24 = scalar_select %p45_p10, %s1666_s29, %s47_s21  }
  0x54   : > { %s304_s17 = scalar_lea.vmem [#allocation3], %s1178_s18  ;;  %p1870_p7 = pnand %p1345_p4, %p56_p5 }
  0x55   : > { %s314_s19 = sshll.u32 %s304_s17, 4  ;;  %s1181_s21 = sshll.u32 %s1852_s16, 7  ;;  %s1866_s19 = int_to_ptr.vmem [resolvable:$true] %s314_s19 }
  0x56   : > { %s301_s25 = scalar_lea.sflag [#allocation4], %s1852_s16  ;;  %p1528_p12 = pneg %p1870_p7 }
  0x58   : > { %s1864_s15 = scalar_lea.hbm %s2070_s0, %s1244_s23  ;;  %s1531_s17 = scalar_lea.hbm %s2070_s0, 256 }
  0x59   : > { %s1526_s23 = scalar_lea.hbm %s1864_s15, 128  ;;  %p1532_p2 = scmp.lt.u32.totalorder %s1864_s15, %s2070_s0 }
  0x5a   : > { %p1527_p11 = scmp.ne.s32.totalorder %s1864_s15, %s1526_s23  ;;  %p1533_p3 = scmp.lt.u32.totalorder %s1531_s17, %s1526_s23 }
  0x5b   : > { %p1535_p9 = scmp.lt.u32.totalorder %s1526_s23, %s1864_s15 }
  0x5c   : > { %p1529_p13 = pnand %p1528_p12, %p1527_p11  ;;  %p1534_p6 = por %p1533_p3, %p1532_p2 }
  0x5e   : > { %p1530_p0 = pneg %p1529_p13  ;;  %p1536_p8 = por %p1535_p9, %p1534_p6 }
  0x60   : > { %p1537_p1 = pnand %p1536_p8, %p1530_p0 }
  0x62   : > { %1540 = shalt.err (!%p1537_p1)
}
  0x63   : > { %s1541_s27 = scalar_lea.vmem %s1866_s19, 128  ;;  %s1686_s18 = smov [#allocation3]  }
  0x64   : > { %p1542_p4 = scmp.ne.s32.totalorder %s1866_s19, %s1541_s27  ;;  %s1546_s26 = sshll.u32 %s1686_s18, 4  ;;  %s1547_s26 = int_to_ptr.vmem [resolvable:$false] %s1546_s26 }
  0x65   : > { %s1548_s3 = scalar_lea.vmem %s1547_s26, 256  ;;  %p1549_p11 = scmp.lt.s32.totalorder %s1866_s19, %s1547_s26 }
  0x66   : > { %p1544_p5 = pnand %p1542_p4, %p1528_p12  ;;  %p1550_p13 = scmp.lt.s32.totalorder %s1548_s3, %s1541_s27 }
  0x68   : > { %p1545_p10 = pneg %p1544_p5  ;;  %p1551_p2 = por %p1550_p13, %p1549_p11 }
  0x6a   : > { %p1552_p3 = pnand %p1551_p2, %p1545_p10 }
  0x6c   : > { %1555 = shalt.err (!%p1552_p3)
}
  0x6d   : > { %1339 = dma.hbm_to_vmem [thread:$0]  (!%p1870_p7), %s1864_s15, 128, %s1866_s19, %s301_s25  }
  0x6e   : > { %s325_s14 = scalar_lea.vmem [#allocation6], %s1181_s21  ;;  %s321_s17 = sand.u32 1, %s1678_s10  }
  0x6f   : > { %s332_s23 = sshll.u32 %s325_s14, 4  ;;  %s2072_s18 = sshll.u32 %s1674_s9, 11  ;;  %s1905_s23 = int_to_ptr.vmem [resolvable:$true] %s332_s23 }
  0x70   : > { %s1912_s3 = scalar_lea.hbm %s2049_s1, %s2072_s18  ;;  %s1914_s0 = scalar_lea.sflag [#allocation7], %s321_s17 }
  0x71   : > { %s1556_s6 = scalar_lea.hbm %s1912_s3, 2048  ;;  %s1561_s19 = scalar_lea.hbm %s2049_s1, 4096 }
  0x72   : > { %p1557_p0 = scmp.ne.s32.totalorder %s1912_s3, %s1556_s6  ;;  %p1562_p8 = scmp.lt.u32.totalorder %s1912_s3, %s2049_s1 }
  0x73   : > { %p1563_p1 = scmp.lt.u32.totalorder %s1561_s19, %s1556_s6  ;;  %p1565_p5 = scmp.lt.u32.totalorder %s1556_s6, %s1912_s3 }
  0x74   : > { %p1559_p6 = pnand %p1557_p0, %p1528_p12 }
  0x75   : > { %p1564_p4 = por %p1563_p1, %p1562_p8 }
  0x76   : > { %p1560_p9 = pneg %p1559_p6 }
  0x77   : > { %p1566_p10 = por %p1565_p5, %p1564_p4 }
  0x79   : > { %p1567_p11 = pnand %p1566_p10, %p1560_p9 }
  0x7b   : > { %1570 = shalt.err (!%p1567_p11)
}
  0x7c   : > { %s1571_s14 = scalar_lea.vmem %s1905_s23, 2048  ;;  %s1687_s17 = smov [#allocation6]  }
  0x7d   : > { %p1572_p13 = scmp.ne.s32.totalorder %s1905_s23, %s1571_s14  ;;  %s1576_s18 = sshll.u32 %s1687_s17, 4  ;;  %s1577_s18 = int_to_ptr.vmem [resolvable:$false] %s1576_s18 }
  0x7e   : > { %s1578_s27 = scalar_lea.vmem %s1577_s18, 4096  ;;  %p1579_p0 = scmp.lt.s32.totalorder %s1905_s23, %s1577_s18 }
  0x7f   : > { %p1574_p2 = pnand %p1572_p13, %p1528_p12  ;;  %p1580_p6 = scmp.lt.s32.totalorder %s1578_s27, %s1571_s14 }
  0x81   : > { %p1575_p3 = pneg %p1574_p2  ;;  %p1581_p8 = por %p1580_p6, %p1579_p0 }
  0x83   : > { %p1582_p1 = pnand %p1581_p8, %p1575_p3 }
  0x85   : > { %1585 = shalt.err (!%p1582_p1)
}
  0x86   : > { %s2073_s6 = smov 4   ;;  %s2074_s26 = smov 64  }
  0x87   : > { %1342 = dma.hbm_to_vmem [thread:$0]  (!%p1870_p7), %s1912_s3, 2048, %s1905_s23, %s1914_s0, %s2074_s26, %s2074_s26, %s2073_s6  }
  0x88   : > { %p2075_p12 = scmp.ne.s32.totalorder %s2066_s13, 0 }
  0x89   : > { %s346_s16 = sand.u32 (!%p2075_p12), 1, %s1662_s28   ;;  %p2076_p9 = scmp.ne.s32.totalorder (!%p2075_p12), %s2065_s12, 0 }
  0x8a   : > { %344 = sbr.rel (%p2075_p12) target bundleno = 1488 (0x5d0), region = 52  ;;  %s1185_s15 = sshll.u32 (!%p2075_p12), %s346_s16, 3 }
  0x8b   : > { %s347_s19 = scalar_lea.sflag (!%p2075_p12), [#allocation4], %s346_s16  ;;  %s1946_s21 = scalar_lea.vmem (!%p2075_p12), [#allocation3], %s1185_s15 }
  0x91   : > { %1637 = dma.done.wait (%p2076_p9), %s347_s19, 128  }
  0x92   : > { %1639 = vsyncadd (%p2076_p9), %s347_s19, 4294967168  ;;  %s355_s22 = sand.u32 1, %s1767_s11   ;;  %s1186_s25 = sshll.u32 %s346_s16, 7 }
  0x93   : > { %s356_s0 = scalar_lea.sflag [#allocation7], %s355_s22  ;;  %s1953_s23 = scalar_lea.vmem [#allocation6], %s1186_s25 }
  0x94   : > { %1641 = dma.done.wait (%p2076_p9), %s356_s0, 2048  }
  0x95   : > { %1643 = vsyncadd (%p2076_p9), %s356_s0, 4294965248  ;;  %p2077_p7 = scmp.eq.s32.totalorder %s1767_s11, 0 }
  0x97   : > { %1645 = dma.done.wait (%p2077_p7), [#allocation7], 2048   ;;  %p2078_p4 = pmov %p2077_p7 }
  0x99   : > { %1647 = vsyncadd (%p2078_p4), [#allocation7], 4294965248  ;;  %p2079_p5 = pmov %p2078_p4 }
  0x9a   : > { %p2080_p10 = pmov %p2078_p4 }
  0x9b   : > { %1649 = dma.done.wait (%p2079_p5), [#allocation10], 1024  }
  0x9c   : > { %1651 = vsyncadd (%p2080_p10), [#allocation10], 4294966272  ;;  %p1189_p11 = scmp.ne.s32.totalorder %s1670_s30, 0 }
  0x9d   : > { %v1688_v0 = vmov (!%p1189_p11), 0.0  }
  0x9e   : > { %406 = sbr.rel (%p1189_p11) target bundleno = 165 (0xa5), region = 72  ;;  %407 = vst [vmem:[#allocation2] sm:$0xff] (!%p1189_p11), %v1688_v0 }
  0xa5 PF: > { %v1409_v1 = vld [vmem:[%s1953_s23 + $0x40] sm:$0xff]   ;;  %v1411_v3 = vld [vmem:[%s1953_s23 + $0x48] sm:$0xff]   ;;  %v1413_v5 = vld [vmem:[%s1953_s23 + $0x50] sm:$0xff]   ;;  %p1208_p13 = scmp.ne.s32.totalorder %s1670_s30, 1 }
  0xa6   : > { %v1410_v2 = vld [vmem:[%s1953_s23] sm:$0xff]   ;;  %1246 = vmatprep.subr.bf16.mxu0 %v1409_v1  ;;  %v1412_v4 = vld [vmem:[%s1953_s23 + $0x8] sm:$0xff]   ;;  %v1414_v6 = vld [vmem:[%s1953_s23 + $0x10] sm:$0xff]   ;;  %v1689_v29 = vmov (!%p1208_p13), 0   ;;  %v621_v48 = vlaneseq (!%p1208_p13)  ;;  %vm1691_vm0 = vmmov (!%p1208_p13), 0   ;;  %vm794_vm4 = vcmask (!%p1208_p13), 64512  }
  0xa7   : > { %1247 = vmatpush3.bf16.msra.mxu0 %v1410_v2  ;;  %v1415_v7 = vld [vmem:[%s1953_s23 + $0x58] sm:$0xff]   ;;  %v1417_v9 = vld [vmem:[%s1953_s23 + $0x60] sm:$0xff]   ;;  %v1419_v11 = vld [vmem:[%s1953_s23 + $0x68] sm:$0xff]   ;;  %1427 = vset.pattern.permute.xlu0 (!%p1208_p13), %v1689_v29 }
  0xa8   : > { %1248 = vmatprep.subr.bf16.mxu0 %v1411_v3  ;;  %v1416_v8 = vld [vmem:[%s1953_s23 + $0x18] sm:$0xff]   ;;  %v1418_v10 = vld [vmem:[%s1953_s23 + $0x20] sm:$0xff]   ;;  %v1420_v14 = vld [vmem:[%s1953_s23 + $0x28] sm:$0xff]   ;;  %v622_v49 = vshrl.u32 (!%p1208_p13), %v621_v48, 7 }
  0xa9   : > { %v409_v12 = vld [vmem:[%s1946_s21] sm:$0xff]  ;;  %v408_v21 = vld [vmem:[#allocation2] sm:$0xff] }
  0xaa   : > { %v1191_v13 = vcombine.high %v409_v12, %v409_v12  ;;  %v1421_v15 = vld [vmem:[%s1953_s23 + $0x70] sm:$0xff]   ;;  %v1423_v17 = vld [vmem:[%s1953_s23 + $0x78] sm:$0xff]   ;;  %v1190_v19 = vcombine.low %v409_v12, %v409_v12  ;;  %v1428_v27 = vld [vmem:[#allocation8 + $0x4] ss:$8 sps:$4 sm:$0xff] (!%p1208_p13)   ;;  %v627_v50 = vsub.s32 (!%p1208_p13), 1, %v622_v49  ;;  %v623_v59 = vsub.s32 (!%p1208_p13), 0, %v622_v49 }
  0xab   : > { %1249 = vmatpush3.bf16.msra.mxu0 %v1412_v4  ;;  %v1422_v16 = vld [vmem:[%s1953_s23 + $0x30] sm:$0xff]   ;;  %v1424_v18 = vld [vmem:[%s1953_s23 + $0x38] sm:$0xff]   ;;  %v1430_v28 = vld [vmem:[#allocation8] ss:$8 sps:$4 sm:$0xff] (!%p1208_p13)  }
  0xac   : > { %1250 = vmatprep.subr.bf16.mxu0 %v1413_v5  ;;  %577 = vmatprep.mubr.bf16.mxu0 %v1191_v13  ;;  %v1431_v30 = vld [vmem:[#allocation8 + $0x14] ss:$8 sps:$4 sm:$0xff] (!%p1208_p13)   ;;  %v1433_v31 = vld [vmem:[#allocation8 + $0x10] ss:$8 sps:$4 sm:$0xff] (!%p1208_p13)   ;;  %v1434_v32 = vld [vmem:[#allocation8 + $0x24] ss:$8 sps:$4 sm:$0xff] (!%p1208_p13)  }
  0xad   : > { %v1436_v33 = vld [vmem:[#allocation8 + $0x20] ss:$8 sps:$4 sm:$0xff] (!%p1208_p13)   ;;  %v1437_v34 = vld [vmem:[#allocation8 + $0x34] ss:$8 sps:$4 sm:$0xff] (!%p1208_p13)   ;;  %v1439_v35 = vld [vmem:[#allocation8 + $0x30] ss:$8 sps:$4 sm:$0xff] (!%p1208_p13)  }
  0xae   : > { %v1440_v37 = vld [vmem:[#allocation8 + $0x44] ss:$8 sps:$4 sm:$0xff] (!%p1208_p13)   ;;  %v1209_v38 = vld [vmem:[%s2050_s2] ss:$0 sm:$0xff] (!%p1208_p13)  ;;  %v1443_v41 = vld [vmem:[#allocation8 + $0x54] ss:$8 sps:$4 sm:$0xff] (!%p1208_p13)  }
  0xaf   : > { %1251 = vmatpush3.bf16.msra.mxu0 %v1414_v6  ;;  %v1442_v40 = vld [vmem:[#allocation8 + $0x40] ss:$8 sps:$4 sm:$0xff] (!%p1208_p13)   ;;  %v1445_v42 = vld [vmem:[#allocation8 + $0x50] ss:$8 sps:$4 sm:$0xff] (!%p1208_p13)   ;;  %v1446_v43 = vld [vmem:[#allocation8 + $0x64] ss:$8 sps:$4 sm:$0xff] (!%p1208_p13)  }
  0xb0   : > { %1252 = vmatprep.subr.bf16.mxu0 %v1415_v7  ;;  %v1448_v44 = vld [vmem:[#allocation8 + $0x60] ss:$8 sps:$4 sm:$0xff] (!%p1208_p13)   ;;  %v1449_v45 = vld [vmem:[#allocation8 + $0x74] ss:$8 sps:$4 sm:$0xff] (!%p1208_p13)   ;;  %v1451_v46 = vld [vmem:[#allocation8 + $0x70] ss:$8 sps:$4 sm:$0xff] (!%p1208_p13)  }
  0xb1   : > { %v619_v51 = vld [vmem:[%s2052_s4] sm:$0x3] (!%p1208_p13)  ;;  %v1690_v5 = vmov (!%p1208_p13), 0.0  }
  0xb2   : > { %v628_v52 = vrot.slane (!%p1208_p13), %v619_v51, %v627_v50  ;;  %v624_v60 = vrot.slane (!%p1208_p13), %v619_v51, %v623_v59  ;;  %v1227_v2 = vld [vmem:[%s2053_s5] ss:$0 sm:$0xff] (!%p1208_p13)  ;;  %1286 = vmatprep.subr.mxu1 (!%p1208_p13), %v1690_v5  ;;  %1288 = vmatprep.mubr.msk.f32.mxu1 (!%p1208_p13), %vm1691_vm0, %v1690_v5 }
  0xb3   : > { %1253 = vmatpush3.bf16.msra.mxu0 %v1416_v8 }
  0xb4   : > { %1254 = vmatprep.subr.bf16.mxu0 %v1417_v9 }
  0xb7   : > { %1255 = vmatpush3.bf16.msra.mxu0 %v1418_v10 }
  0xb8   : > { %1256 = vmatprep.subr.bf16.mxu0 %v1419_v11 }
  0xbb   : > { %1257 = vmatpush3.bf16.msra.mxu0 %v1420_v14  ;;  %v787_v14 = vadd.s32 (!%p1208_p13), 1, %v622_v49 }
  0xbc   : > { %1258 = vmatprep.subr.bf16.mxu0 %v1421_v15 }
  0xbf   : > { %1259 = vmatpush3.bf16.msra.mxu0 %v1422_v16 }
  0xc0   : > { %1260 = vmatprep.subr.bf16.mxu0 %v1423_v17  ;;  %v782_v17 = vand.u32 (!%p1208_p13), 127, %v621_v48 }
  0xc3   : > { %1261 = vmatpush3.bf16.msra.mxu0 %v1424_v18  ;;  %v785_v18 = vmul.u32 (!%p1208_p13), 4, %v622_v49 }
  0xc4   : > { %711 = vmatprep.subr.bf16.mxu0 (!%p1208_p13), %v1428_v27  ;;  %v1456_v27 = vld [vmem:[#allocation9 + $0x20] sm:$0xff] (!%p1208_p13)  }
  0xc5   : > { %vm786_vm1 = vcmp.ge.s32.totalorder (!%p1208_p13), %v782_v17, %v785_v18 }
  0xc6   : > { %578 = vmatmul.mubr.bf16.vlgmr.msra.gmra.mrb[0].mxu0 %v1190_v19  ;;  %v788_v19 = vmul.u32 (!%p1208_p13), 4, %v787_v14 }
  0xc7   : > { %743 = vmatprep.mubr.bf16.mxu0 (!%p1208_p13), %v1689_v29  ;;  %712 = vmatpush1.bf16.msra.mxu0 (!%p1208_p13), %v1430_v28  ;;  %v1457_v28 = vld [vmem:[#allocation9 + $0x28] sm:$0xff] (!%p1208_p13)   ;;  %v1458_v29 = vld [vmem:[#allocation9 + $0x30] sm:$0xff] (!%p1208_p13)  }
  0xc8   : > { %713 = vmatprep.subr.bf16.mxu0 (!%p1208_p13), %v1431_v30  ;;  %vm789_vm2 = vcmp.lt.s32.totalorder (!%p1208_p13), %v782_v17, %v788_v19 }
  0xc9   : > { %vm790_vm3 = vmand (!%p1208_p13), %vm786_vm1, %vm789_vm2 }
  0xcb   : > { %714 = vmatpush1.bf16.msra.mxu0 (!%p1208_p13), %v1433_v31 }
  0xcc   : > { %715 = vmatprep.subr.bf16.mxu0 (!%p1208_p13), %v1434_v32 }
  0xcf   : > { %716 = vmatpush1.bf16.msra.mxu0 (!%p1208_p13), %v1436_v33 }
  0xd0   : > { %717 = vmatprep.subr.bf16.mxu0 (!%p1208_p13), %v1437_v34 }
  0xd3   : > { %718 = vmatpush1.bf16.msra.mxu0 (!%p1208_p13), %v1439_v35  ;;  %v1459_v35 = vld [vmem:[#allocation9 + $0x38] sm:$0xff] (!%p1208_p13)  }
  0xd4   : > { %719 = vmatprep.subr.bf16.mxu0 (!%p1208_p13), %v1440_v37 }
  0xd7   : > { %720 = vmatpush1.bf16.msra.mxu0 (!%p1208_p13), %v1442_v40 }
  0xd8   : > { %721 = vmatprep.subr.bf16.mxu0 (!%p1208_p13), %v1443_v41 }
  0xdb   : > { %722 = vmatpush1.bf16.msra.mxu0 (!%p1208_p13), %v1445_v42 }
  0xdc   : > { %723 = vmatprep.subr.bf16.mxu0 (!%p1208_p13), %v1446_v43 }
  0xdf   : > { %724 = vmatpush1.bf16.msra.mxu0 (!%p1208_p13), %v1448_v44 }
  0xe0   : > { %725 = vmatprep.subr.bf16.mxu0 (!%p1208_p13), %v1449_v45 }
  0xe3   : > { %726 = vmatpush1.bf16.msra.mxu0 (!%p1208_p13), %v1451_v46 }
  0xe4   : > { %1281 = vmatprep.subr.mxu0 (!%p1208_p13), %v1690_v5 }
 0x199   : > { %v1262_v20 = vpop.f32.mrb[0].mxu0  ;;  %590 = sbr.rel (%p1208_p13) target bundleno = 1463 (0x5b7), region = 76 }
 0x19a   : > { %v1263_v22 = vpop.f32.mrb[1].mxu0 }
 0x19b   : > { %v1264_v23 = vadd.f32 %v1263_v22, %v1262_v20  ;;  %v1265_v24 = vpop.f32.mrb[2].mxu0  ;;  %v1228_v20 = vsel (!%p1208_p13), %vm790_vm3, 1.0, %v1690_v5 }
 0x19c   : > { %v1266_v25 = vpop.f32.mrb[3].mxu0  ;;  %v1453_v24 = vld [vmem:[#allocation9 + $0x8] sm:$0xff] (!%p1208_p13)  }
 0x19d   : > { %v585_v26 = vadd.f32 %v1264_v23, %v408_v21  ;;  %v1452_v23 = vld [vmem:[#allocation9] sm:$0xff] (!%p1208_p13)   ;;  %v1454_v25 = vld [vmem:[#allocation9 + $0x10] sm:$0xff] (!%p1208_p13)  }
 0x19f   : > { %586 = vst [vmem:[#allocation2] sm:$0xff] %v585_v26  ;;  %v1455_v26 = vld [vmem:[#allocation9 + $0x18] sm:$0xff] (!%p1208_p13)  }
 0x1a6   : > { %v591_v36 = vld [vmem:[#allocation2] sm:$0xff] }
 0x1a7   : > { %v1989_v39 = vadd.f32 %v1209_v38, %v591_v36 }
 0x1a9   : > { %600 = vst [vmem:[#allocation2] sm:$0xff] %v1989_v39  ;;  %v602_v47 = vpack.c.bf16 %v1989_v39, %v1989_v39 }
 0x1ab   : > { %744 = vmatmul.mubr.bf16.vlgmr.msra.gmra.mrb[0].mxu0 %v602_v47 }
 0x1ac   : > { %1283 = vmatprep.mubr.msk.f32.mxu0 %vm1691_vm0, %v1690_v5 }
 0x27e   : > { %v745_v53 = vpop.f32.mrb[0].mxu0 }
 0x27f   : > { %v747_v54 = vpop.f32.mrb[1].mxu0  ;;  %v746_v61 = vadd.f32 %v745_v53, %v624_v60 }
 0x280   : > { %v748_v55 = vadd.f32 %v747_v54, %v628_v52  ;;  %v749_v56 = vpop.f32.mrb[2].mxu0 }
 0x281   : > { %v750_v57 = vpop.f32.mrb[3].mxu0 }
 0x282   : > { %v1226_v58 = vmul.f32 -1.442695, %v748_v55 }
 0x284   : > { %1460 = vpow2.f32 %v1226_v58 }
 0x285   : > { %1462 = vtanh.f32 %v746_v61 }
 0x28e   : > { %v1461_v62 = vpop.eup %1460 }
 0x28f   : > { %v756_v63 = vadd.f32 1.0, %v1461_v62  ;;  %v1463_v0 = vpop.eup %1462 }
 0x291   : > { %1464 = vrcp.f32 %v756_v63 }
 0x29b   : > { %v1465_v1 = vpop.eup %1464 }
 0x29c   : > { %v759_v3 = vmul.f32 %v1465_v1, %v1463_v0 }
 0x29e   : > { %v767_v4 = vmul.f32 %v1227_v2, %v759_v3 }
 0x2a0   : > { %768 = vadd.xlane.f32.xlu0 %v767_v4 }
 0x32d   : > { %v769_v6 = vpop.xlane.xlu0 %768 }
 0x32e   : > { %v770_v7 = vrot.slane %v769_v6, 4 }
 0x330   : > { %v771_v8 = vmax.f32 %v769_v6, %v770_v7 }
 0x332   : > { %v772_v9 = vrot.slane %v771_v8, 2 }
 0x334   : > { %v773_v10 = vmax.f32 %v771_v8, %v772_v9 }
 0x336   : > { %v774_v11 = vrot.slane %v773_v10, 1 }
 0x338   : > { %v775_v12 = vmax.f32 %v773_v10, %v774_v11 }
 0x33a   : > { %1311 = vpush %v775_v12 }
 0x36b   : > { %s1312_s18 = spop %1311 }
 0x36c   : > { %v777_v13 = vstv %s1312_s18 }
 0x36d   : > { %v778_v15 = vsub.f32 %v769_v6, %v777_v13 }
 0x36f   : > { %v779_v16 = vmul.f32 1.442695, %v778_v15 }
 0x371   : > { %1466 = vpow2.f32 %v779_v16 }
 0x37b   : > { %v1467_v21 = vpop.eup %1466 }
 0x37c   : > { %1287 = vmatpush3.msra.mxu1 %v1467_v21  ;;  %v793_v22 = vmul.f32 %v1467_v21, %v1989_v39  ;;  %v1231_v39 = vld [vmem:[%s2055_s7] ss:$0 sm:$0xff] }
 0x37d   : > { %1289 = vmatmul.mubr.msk.f32.vlgmr.msra.gmra.mrb[0].mxu1 %vm794_vm4, %v1228_v20  ;;  %1291 = vmatprep.subr.bf16.mxu1 %v1690_v5 }
 0x37e   : > { %1282 = vmatpush3.msra.mxu0 %v793_v22  ;;  %1307 = vmatprep.mubr.msk.bf16.mxu1 %vm1691_vm0, %v1690_v5 }
 0x37f   : > { %1284 = vmatmul.mubr.msk.f32.vlgmr.msra.gmra.mrb[4].mxu0 %vm794_vm4, %v1228_v20  ;;  %1292 = vmatpush3.bf16.msra.mxu1 %v1452_v23 }
 0x380   : > { %1293 = vmatprep.subr.bf16.mxu1 %v1690_v5 }
 0x383   : > { %1294 = vmatpush3.bf16.msra.mxu1 %v1453_v24 }
 0x384   : > { %1295 = vmatprep.subr.bf16.mxu1 %v1690_v5 }
 0x387   : > { %1296 = vmatpush3.bf16.msra.mxu1 %v1454_v25 }
 0x388   : > { %1297 = vmatprep.subr.bf16.mxu1 %v1690_v5 }
 0x38b   : > { %1298 = vmatpush3.bf16.msra.mxu1 %v1455_v26 }
 0x38c   : > { %1299 = vmatprep.subr.bf16.mxu1 %v1690_v5 }
 0x38f   : > { %1300 = vmatpush3.bf16.msra.mxu1 %v1456_v27 }
 0x390   : > { %1301 = vmatprep.subr.bf16.mxu1 %v1690_v5 }
 0x393   : > { %1302 = vmatpush3.bf16.msra.mxu1 %v1457_v28 }
 0x394   : > { %1303 = vmatprep.subr.bf16.mxu1 %v1690_v5 }
 0x397   : > { %1304 = vmatpush3.bf16.msra.mxu1 %v1458_v29 }
 0x398   : > { %1305 = vmatprep.subr.bf16.mxu1 %v1690_v5 }
 0x39b   : > { %1306 = vmatpush3.bf16.msra.mxu1 %v1459_v35 }
 0x450   : > { %v934_v30 = vpop.f32.mrb[0].mxu1 }
 0x451   : > { %1468 = vrcp.f32 %v934_v30  ;;  %v1290_v31 = vpop.f32.mrb[1].mxu1 }
 0x452   : > { %v864_v32 = vpop.f32.mrb[4].mxu0 }
 0x453   : > { %v1285_v33 = vpop.f32.mrb[5].mxu0 }
 0x45b   : > { %v1469_v34 = vpop.eup %1468 }
 0x45c   : > { %941 = vperm.xlu0 %1427, %v1469_v34  }
 0x4db   : > { %v942_v36 = vpop.permute.xlu0 %941 }
 0x4dc   : > { %v944_v37 = vmul.f32 %v942_v36, %v864_v32 }
 0x4de   : > { %v945_v38 = vpack.c.bf16 %v944_v37, %v944_v37 }
 0x4e0   : > { %1308 = vmatmul.mubr.bf16.vlgmr.msra.gmra.mrb[4].mxu1 %v945_v38 }
 0x5b3   : > { %v1051_v40 = vpop.f32.mrb[4].mxu1 }
 0x5b4   : > { %v1052_v41 = vadd.f32 %v1231_v39, %v1051_v40  ;;  %v1309_v42 = vpop.f32.mrb[5].mxu1 }
 0x5b5   : > { %v1054_v43 = vpop.f32.mrb[6].mxu1 }
 0x5b6   : > { %1057 = vst [vmem:[#allocation11] sm:$0x3] %v1052_v41  ;;  %v1310_v44 = vpop.f32.mrb[7].mxu1 }
 0x5b7 PF: > { %p1348_p2 = scmp.eq.s32.totalorder %s1767_s11, 1  ;;  %s1692_s26 = smov [#allocation11]  }
 0x5b8   : > { %s1067_s16 = sshll.u32 %s1692_s26, 4  ;;  %s1068_s16 = int_to_ptr.vmem [resolvable:$true] %s1067_s16 }
 0x5b9   : > { %s1586_s15 = scalar_lea.vmem %s1068_s16, 32  ;;  %p1593_p8 = scmp.lt.s32.totalorder %s1068_s16, %s1068_s16 }
 0x5ba   : > { %p1587_p3 = scmp.ne.s32.totalorder %s1068_s16, %s1586_s15  ;;  %p1594_p1 = scmp.lt.s32.totalorder %s1586_s15, %s1586_s15 }
 0x5bc   : > { %p1588_p0 = pnand %p1587_p3, %p1348_p2  ;;  %p1595_p12 = por %p1594_p1, %p1593_p8 }
 0x5be   : > { %p1589_p6 = pneg %p1588_p0 }
 0x5c0   : > { %p1596_p9 = pnand %p1595_p12, %p1589_p6 }
 0x5c2   : > { %1599 = shalt.err (!%p1596_p9)
}
 0x5c3   : > { %s1600_s22 = scalar_lea.hbm %s2056_s8, 32 }
 0x5c4   : > { %p1601_p7 = scmp.ne.s32.totalorder %s2056_s8, %s1600_s22  ;;  %p1606_p10 = scmp.lt.u32.totalorder %s1600_s22, %s2056_s8 }
 0x5c6   : > { %p1602_p4 = pnand %p1601_p7, %p1348_p2 }
 0x5c8   : > { %p1603_p5 = pneg %p1602_p4 }
 0x5ca   : > { %p1608_p11 = pnand %p1606_p10, %p1603_p5 }
 0x5cc   : > { %1611 = shalt.err (!%p1608_p11)
}
 0x5cd   : > { %1326 = dma.vmem_to_hbm [thread:$0]  (%p1348_p2), %s1068_s16, 32, %s2056_s8, [#allocation5]  }
 0x5ce   : > { %1653 = dma.done.wait (%p1348_p2), [#allocation5], 32  }
 0x5cf   : > { %1655 = vsyncadd (%p1348_p2), [#allocation5], 4294967264 }
 0x5d0 PF: > { %s26_s10 = sadd.s32 1, %s1678_s10   ;;  %s2081_s27 = smov %s1662_s28 }
 0x5d1   : > { %p23_p13 = scmp.ge.s32.totalorder %s26_s10, 4   ;;  %s2082_s28 = smov %s1666_s29 }
 0x5d2   : > { %s2083_s29 = smov %s1859_s24  ;;  %s2084_s30 = smov %s1674_s9 }
 0x5d3   : > { %s2085_s9 = smov %s2087_s20  ;;  %25 = sbr.rel (!%p23_p13) target bundleno = 12 (0xc), region = 119 }
 0x5da   :  { %1080 = vsyncpa [#allocation4], 1 }
 0x5db   :  { %1082 = vsyncpa [#allocation4 + $0x1], 1 }
 0x5dc   :  { %1083 = vsyncpa [#allocation7], 1 }
 0x5dd   :  { %1085 = vsyncpa [#allocation7 + $0x1], 1 }
 0x5de   :  { %1086 = vsyncpa [#allocation10], 1 }
 0x5df   :  { %1087 = vsyncpa [#allocation5], 1 }
 0x5e0   :  { %1089 = vsyncpa [#allocation5 + $0x1], 1 }

</bundles_post_ra>
